<compile_context>
chip_gen: v7x
topology: tpu7x:2x2x1
jax: 0.10.0
libtpu: 0.0.40
codegen_flags: <defaults>
</compile_context>

<pallas_src>
import functools

import jax
import jax.numpy as jnp
from jax import lax
from jax.experimental import pallas as pl
from jax.experimental.pallas import tpu as pltpu

_NEG_LARGE = -1.0e30  # finite "-inf" so padded lanes never create NaNs


def _ce_kernel(logits_ref, labels_ref, out_ref, m_i, l_i, t_i, *,
               n, tn, tc, c_rem, n_rem):
    i = pl.program_id(0)          # batch tile (parallel)
    j = pl.program_id(1)          # class tile (arbitrary / reduction, innermost)
    nj = pl.num_programs(1)

    @pl.when(j == 0)
    def _init():
        m_i[...] = jnp.full_like(m_i, _NEG_LARGE)
        l_i[...] = jnp.zeros_like(l_i)
        t_i[...] = jnp.zeros_like(t_i)

    # j-dependence on scalars only: local label index and loop-invariant iota.
    labels_local = labels_ref[...] - j * tc                 # (tn, 1) int32
    col = lax.broadcasted_iota(jnp.int32, (tn, tc), 1)      # loop-invariant

    def update(x_m):
        # Online (streaming) log-sum-exp update.
        m_prev = m_i[...]
        m_new = jnp.maximum(m_prev, jnp.max(x_m, axis=-1, keepdims=True))
        alpha = jnp.exp(m_prev - m_new)
        p = jnp.exp(x_m - m_new)                            # masked lanes -> 0
        l_i[...] = alpha * l_i[...] + jnp.sum(p, axis=-1, keepdims=True)
        m_i[...] = m_new
        # Target logit via one-hot compare against local iota (VPU + XLU).
        hit = col == labels_local
        t_i[...] += jnp.sum(jnp.where(hit, x_m, 0.0), axis=-1, keepdims=True)

    x = logits_ref[...].astype(jnp.float32)                 # (tn, tc)
    if c_rem == 0:
        # Common aligned case: no per-lane masking in the hot loop at all.
        update(x)
    else:
        @pl.when(j < nj - 1)
        def _full_tile():
            update(x)

        @pl.when(j == nj - 1)
        def _tail_tile():
            # Only the last class tile pays for the lane mask.
            update(jnp.where(col < c_rem, x, _NEG_LARGE))

    @pl.when(j == nj - 1)
    def _finalize():
        lse = m_i[...] + jnp.log(l_i[...])                  # (tn, 1)
        per_row = lse - t_i[...]                            # -log_softmax[target]
        if n_rem != 0:
            # Drop padded rows (only the last batch tile has any); this also
            # squashes any NaN/Inf produced from unspecified padded-row data.
            row = lax.broadcasted_iota(jnp.int32, (tn, 1), 0) + i * tn
            per_row = jnp.where(row < n, per_row, 0.0)
        out_ref[...] = jnp.broadcast_to(jnp.sum(per_row), out_ref.shape)


def _round_down(x, align):
    return (x // align) * align


def _round_up(x, align):
    return -(-x // align) * align


def _pick_tile(requested, dim, align):
    """Largest legal tile <= requested: full dim, or a multiple of align."""
    t = min(requested, dim)
    if t >= dim:
        return dim
    return max(align, _round_down(t, align))


def _pick_tn(requested, n, align):
    """Batch tile: aligned, and >= 2 tiles whenever N allows (v7x megacore)."""
    if n <= align:
        return n
    t = min(requested, n)
    half = _round_up(-(-n // 2), align)   # ceil(n/2) rounded up to align
    t = min(t, half)                      # guarantees cdiv(n, t) >= 2
    t = max(align, _round_down(t, align))
    return n if t >= n else t


def _vmem_limit_bytes():
    """Generation-aware VMEM budget: ~half of physical (64 MiB v5e/v6e, 32 MiB v7x)."""
    phys = 64 * 1024 * 1024               # conservative default (v7x per-TC)
    try:
        phys = int(pltpu.get_tpu_info().vmem_capacity_bytes)
    except Exception:
        pass
    return max(32 * 1024 * 1024, min(phys // 2, 64 * 1024 * 1024))


def cross_entropy_loss(y_pred, y_true, one_hot_encoding=False,
                       block_n=256, block_c=8192):
    """Forward pass of the CrossEntropyLoss module (mean reduction).

    y_pred: [N, C] logits (f32 / bf16 / int8 kept in native dtype through DMA).
    y_true: [N] int class indices, or [N, C] scores when one_hot_encoding=True.
    Returns a scalar f32.
    """
    if one_hot_encoding:
        # glue: same as y_true.max(dim=-1).indices in torch
        y_true = jnp.argmax(y_true, axis=-1)

    n, c = y_pred.shape
    labels = y_true.astype(jnp.int32).reshape(n, 1)

    itemsize = jnp.dtype(y_pred.dtype).itemsize
    align_n = {1: 32, 2: 16, 4: 8}.get(itemsize, 8)   # dtype-aware sublane align
    tn = _pick_tn(block_n, n, align_n)

    # VMEM budget: double-buffered native-dtype logits (2 * tn * tc * itemsize)
    # plus ~3 full-tile f32 temporaries (x/x_m/p) inside the kernel, with
    # headroom for labels / scratch / output buffers / Mosaic internal scratch.
    vmem_limit = _vmem_limit_bytes()
    data_budget = vmem_limit - 8 * 1024 * 1024
    max_tc = max(128, data_budget // (tn * (2 * itemsize + 3 * 4)))
    tc = _pick_tile(min(block_c, max_tc), c, 128)     # lane-aligned class tile

    grid_n = pl.cdiv(n, tn)
    grid_c = pl.cdiv(c, tc)
    c_rem = c % tc
    n_rem = n % tn

    kernel = functools.partial(_ce_kernel, n=n, tn=tn, tc=tc,
                               c_rem=c_rem, n_rem=n_rem)

    partials = pl.pallas_call(
        kernel,
        out_shape=jax.ShapeDtypeStruct((grid_n, 1, 128), jnp.float32),
        grid_spec=pltpu.PrefetchScalarGridSpec(
            num_scalar_prefetch=0,
            grid=(grid_n, grid_c),
            in_specs=[
                # NOTE: if xprof shows exposed DMA at tile boundaries, sweep
                # pipeline_mode=pl.Buffered(3) here (budget the extra tile).
                pl.BlockSpec((tn, tc), lambda i, j: (i, j)),
                # constant across the class axis -> labels not re-fetched per C tile
                pl.BlockSpec((tn, 1), lambda i, j: (i, 0)),
            ],
            out_specs=pl.BlockSpec((1, 1, 128), lambda i, j: (i, 0, 0)),
            scratch_shapes=[
                pltpu.VMEM((tn, 1), jnp.float32),   # m_i: running max
                pltpu.VMEM((tn, 1), jnp.float32),   # l_i: running sum of exp
                pltpu.VMEM((tn, 1), jnp.float32),   # t_i: accumulated target logit
            ],
        ),
        compiler_params=pltpu.CompilerParams(
            dimension_semantics=("parallel", "arbitrary"),
            vmem_limit_bytes=int(vmem_limit),
        ),
    )(y_pred, labels)

    # Tiny finalization in the wrapper: sum per-tile partials, mean over N.
    return jnp.sum(partials[:, 0, 0]) / jnp.float32(n)


def _ref_loss(y_pred, y_true):
    lsm = jax.nn.log_softmax(y_pred.astype(jnp.float32), axis=-1)
    return -jnp.mean(jnp.take_along_axis(lsm, y_true[:, None], axis=-1))


if __name__ == "__main__":
    key = jax.random.PRNGKey(0)
    k1, k2, k3, k4, k5, k6 = jax.random.split(key, 6)

    # --- small single-tile case (class-index path, module default) ---
    N, C = 8, 32
    y_pred = jax.random.normal(k1, (N, C), dtype=jnp.float32)
    y_true = jax.random.randint(k2, (N,), 0, C, dtype=jnp.int32)

    loss = jax.block_until_ready(cross_entropy_loss(y_pred, y_true))
    ref = _ref_loss(y_pred, y_true)
    assert jnp.allclose(loss, ref, atol=1e-5, rtol=1e-5), (loss, ref)

    # one-hot path (argmax glue before the kernel, as in the torch module)
    y_true_oh = jax.nn.one_hot(y_true, C, dtype=jnp.float32)
    loss_oh = jax.block_until_ready(
        cross_entropy_loss(y_pred, y_true_oh, one_hot_encoding=True))
    assert jnp.allclose(loss_oh, ref, atol=1e-5, rtol=1e-5), (loss_oh, ref)

    # --- multi-tile case with remainder rows/cols: exercises streaming LSE,
    #     last-tile lane masking, padded-row masking, per-tile partials (3x3) ---
    N2, C2 = 20, 300
    y_pred2 = jax.random.normal(k3, (N2, C2), dtype=jnp.float32)
    y_true2 = jax.random.randint(k4, (N2,), 0, C2, dtype=jnp.int32)

    loss2 = jax.block_until_ready(
        cross_entropy_loss(y_pred2, y_true2, block_n=8, block_c=128))
    ref2 = _ref_loss(y_pred2, y_true2)
    assert jnp.allclose(loss2, ref2, atol=1e-5, rtol=1e-5), (loss2, ref2)

    # --- bf16 logits: native-dtype DMA, dtype-aware alignment, grid_n >= 2 ---
    N3, C3 = 64, 1000
    y_pred3 = jax.random.normal(k5, (N3, C3), dtype=jnp.float32).astype(jnp.bfloat16)
    y_true3 = jax.random.randint(k6, (N3,), 0, C3, dtype=jnp.int32)

    loss3 = jax.block_until_ready(cross_entropy_loss(y_pred3, y_true3))
    ref3 = _ref_loss(y_pred3, y_true3)
    assert jnp.allclose(loss3, ref3, atol=1e-4, rtol=1e-4), (loss3, ref3)

    print("KERNEL_OK")
</pallas_src>

<mosaic_0001>
module attributes {stable_mosaic.version = 11 : i64} {
  func.func @_ce_kernel(%arg0: i32, %arg1: i32, %arg2: memref<8x32xf32, #tpu.memory_space<vmem>>, %arg3: memref<8x1xi32, #tpu.memory_space<vmem>>, %arg4: memref<1x1x128xf32, #tpu.memory_space<vmem>>, %arg5: memref<8x1xf32, #tpu.memory_space<vmem>>, %arg6: memref<8x1xf32, #tpu.memory_space<vmem>>, %arg7: memref<8x1xf32, #tpu.memory_space<vmem>>) attributes {dimension_semantics = [#tpu.dimension_semantics<parallel>, #tpu.dimension_semantics<arbitrary>], iteration_bounds = array<i64: 1, 1>, scalar_prefetch = 0 : i64, scratch_operands = 3 : i64, tpu.core_type = #tpu.core_type<tc>, window_params = [{transform_indices = @transform_0, window_bounds = array<i64: 8, 32>}, {transform_indices = @transform_1, window_bounds = array<i64: 8, 1>}, {transform_indices = @transform_2, window_bounds = array<i64: 1, 1, 128>}]} {
    %c0_i32 = arith.constant 0 : i32
    %0 = arith.cmpi eq, %arg1, %c0_i32 : i32
    %1 = arith.extui %0 : i1 to i32
    %c0_i32_0 = arith.constant 0 : i32
    %2 = arith.cmpi ne, %1, %c0_i32_0 : i32
    scf.if %2 {
      %cst_21 = arith.constant -1.000000e+30 : f32
      %37 = vector.broadcast %cst_21 : f32 to vector<8x1xf32>
      %c0_22 = arith.constant 0 : index
      %c0_23 = arith.constant 0 : index
      %38 = vector.load %arg5[%c0_22, %c0_23] : memref<8x1xf32, #tpu.memory_space<vmem>>, vector<8x1xf32>
      tpu.vector_store %arg5[%c0_22, %c0_23], %37 {strides = array<i32>} : memref<8x1xf32, #tpu.memory_space<vmem>>, vector<8x1xf32>,
      %cst_24 = arith.constant 0.000000e+00 : f32
      %39 = vector.broadcast %cst_24 : f32 to vector<8x1xf32>
      %c0_25 = arith.constant 0 : index
      %c0_26 = arith.constant 0 : index
      %40 = vector.load %arg6[%c0_25, %c0_26] : memref<8x1xf32, #tpu.memory_space<vmem>>, vector<8x1xf32>
      tpu.vector_store %arg6[%c0_25, %c0_26], %39 {strides = array<i32>} : memref<8x1xf32, #tpu.memory_space<vmem>>, vector<8x1xf32>,
      %cst_27 = arith.constant 0.000000e+00 : f32
      %41 = vector.broadcast %cst_27 : f32 to vector<8x1xf32>
      %c0_28 = arith.constant 0 : index
      %c0_29 = arith.constant 0 : index
      %42 = vector.load %arg7[%c0_28, %c0_29] : memref<8x1xf32, #tpu.memory_space<vmem>>, vector<8x1xf32>
      tpu.vector_store %arg7[%c0_28, %c0_29], %41 {strides = array<i32>} : memref<8x1xf32, #tpu.memory_space<vmem>>, vector<8x1xf32>,
    } else {
    }
    %c0 = arith.constant 0 : index
    %c0_1 = arith.constant 0 : index
    %3 = vector.load %arg3[%c0, %c0_1] : memref<8x1xi32, #tpu.memory_space<vmem>>, vector<8x1xi32>
    %c32_i32 = arith.constant 32 : i32
    %4 = arith.muli %arg1, %c32_i32 : i32
    %5 = vector.broadcast %4 : i32 to vector<8x1xi32>
    %6 = arith.subi %3, %5 : vector<8x1xi32>
    %7 = tpu.iota {dimensions = array<i32: 1>} : vector<8x32xi32>
    %c0_2 = arith.constant 0 : index
    %c0_3 = arith.constant 0 : index
    %8 = vector.load %arg2[%c0_2, %c0_3] : memref<8x32xf32, #tpu.memory_space<vmem>>, vector<8x32xf32>
    %c0_4 = arith.constant 0 : index
    %c0_5 = arith.constant 0 : index
    %9 = vector.load %arg5[%c0_4, %c0_5] : memref<8x1xf32, #tpu.memory_space<vmem>>, vector<8x1xf32>
    %cst = arith.constant dense<0xFF800000> : vector<8xf32>
    %10 = vector.multi_reduction <maximumf>, %8, %cst [1] : vector<8x32xf32> to vector<8xf32>
    %11 = vector.shape_cast %10 : vector<8xf32> to vector<8x1xf32>
    %12 = arith.maximumf %9, %11 : vector<8x1xf32>
    %13 = arith.subf %9, %12 : vector<8x1xf32>
    %14 = math.exp %13 : vector<8x1xf32>
    %15 = vector.broadcast %12 : vector<8x1xf32> to vector<8x32xf32>
    %16 = arith.subf %8, %15 : vector<8x32xf32>
    %17 = math.exp %16 : vector<8x32xf32>
    %c0_6 = arith.constant 0 : index
    %c0_7 = arith.constant 0 : index
    %18 = vector.load %arg6[%c0_6, %c0_7] : memref<8x1xf32, #tpu.memory_space<vmem>>, vector<8x1xf32>
    %19 = arith.mulf %14, %18 : vector<8x1xf32>
    %cst_8 = arith.constant dense<0.000000e+00> : vector<8xf32>
    %20 = vector.multi_reduction <add>, %17, %cst_8 [1] : vector<8x32xf32> to vector<8xf32>
    %21 = vector.shape_cast %20 : vector<8xf32> to vector<8x1xf32>
    %22 = arith.addf %19, %21 : vector<8x1xf32>
    %c0_9 = arith.constant 0 : index
    %c0_10 = arith.constant 0 : index
    %23 = vector.load %arg6[%c0_9, %c0_10] : memref<8x1xf32, #tpu.memory_space<vmem>>, vector<8x1xf32>
    tpu.vector_store %arg6[%c0_9, %c0_10], %22 {strides = array<i32>} : memref<8x1xf32, #tpu.memory_space<vmem>>, vector<8x1xf32>,
    %c0_11 = arith.constant 0 : index
    %c0_12 = arith.constant 0 : index
    %24 = vector.load %arg5[%c0_11, %c0_12] : memref<8x1xf32, #tpu.memory_space<vmem>>, vector<8x1xf32>
    tpu.vector_store %arg5[%c0_11, %c0_12], %12 {strides = array<i32>} : memref<8x1xf32, #tpu.memory_space<vmem>>, vector<8x1xf32>,
    %25 = vector.broadcast %6 : vector<8x1xi32> to vector<8x32xi32>
    %26 = arith.cmpi eq, %7, %25 : vector<8x32xi32>
    %c0_13 = arith.constant 0 : index
    %c0_14 = arith.constant 0 : index
    %27 = vector.load %arg7[%c0_13, %c0_14] : memref<8x1xf32, #tpu.memory_space<vmem>>, vector<8x1xf32>
    %cst_15 = arith.constant 0.000000e+00 : f32
    %28 = vector.broadcast %cst_15 : f32 to vector<8x32xf32>
    %29 = arith.select %26, %8, %28 : vector<8x32xi1>, vector<8x32xf32>
    %cst_16 = arith.constant dense<0.000000e+00> : vector<8xf32>
    %30 = vector.multi_reduction <add>, %29, %cst_16 [1] : vector<8x32xf32> to vector<8xf32>
    %31 = vector.shape_cast %30 : vector<8xf32> to vector<8x1xf32>
    %32 = arith.addf %27, %31 : vector<8x1xf32>
    %c0_17 = arith.constant 0 : index
    %c0_18 = arith.constant 0 : index
    %33 = vector.load %arg7[%c0_17, %c0_18] : memref<8x1xf32, #tpu.memory_space<vmem>>, vector<8x1xf32>
    tpu.vector_store %arg7[%c0_17, %c0_18], %32 {strides = array<i32>} : memref<8x1xf32, #tpu.memory_space<vmem>>, vector<8x1xf32>,
    %c0_i32_19 = arith.constant 0 : i32
    %34 = arith.cmpi eq, %arg1, %c0_i32_19 : i32
    %35 = arith.extui %34 : i1 to i32
    %c0_i32_20 = arith.constant 0 : i32
    %36 = arith.cmpi ne, %35, %c0_i32_20 : i32
    scf.if %36 {
      %c0_21 = arith.constant 0 : index
      %c0_22 = arith.constant 0 : index
      %37 = vector.load %arg5[%c0_21, %c0_22] : memref<8x1xf32, #tpu.memory_space<vmem>>, vector<8x1xf32>
      %c0_23 = arith.constant 0 : index
      %c0_24 = arith.constant 0 : index
      %38 = vector.load %arg6[%c0_23, %c0_24] : memref<8x1xf32, #tpu.memory_space<vmem>>, vector<8x1xf32>
      %39 = math.log %38 : vector<8x1xf32>
      %40 = arith.addf %37, %39 : vector<8x1xf32>
      %c0_25 = arith.constant 0 : index
      %c0_26 = arith.constant 0 : index
      %41 = vector.load %arg7[%c0_25, %c0_26] : memref<8x1xf32, #tpu.memory_space<vmem>>, vector<8x1xf32>
      %42 = arith.subf %40, %41 : vector<8x1xf32>
      %43 = vector.shape_cast %42 : vector<8x1xf32> to vector<1x8x1xf32>
      %cst_27 = arith.constant dense<0.000000e+00> : vector<1xf32>
      %44 = vector.multi_reduction <add>, %43, %cst_27 [1, 2] : vector<1x8x1xf32> to vector<1xf32>
      %45 = vector.shape_cast %44 : vector<1xf32> to vector<1x1x1xf32>
      %46 = vector.extract %45[0, 0, 0] : f32 from vector<1x1x1xf32>
      %47 = vector.broadcast %46 : f32 to vector<1x1x128xf32>
      %c0_28 = arith.constant 0 : index
      %c0_29 = arith.constant 0 : index
      %c0_30 = arith.constant 0 : index
      %48 = vector.load %arg4[%c0_28, %c0_29, %c0_30] : memref<1x1x128xf32, #tpu.memory_space<vmem>>, vector<1x1x128xf32>
      tpu.vector_store %arg4[%c0_28, %c0_29, %c0_30], %47 {strides = array<i32>} : memref<1x1x128xf32, #tpu.memory_space<vmem>>, vector<1x1x128xf32>,
    } else {
    }
    return
  }
  func.func @transform_0(%arg0: i32, %arg1: i32) -> (i32, i32) {
    %c0_i32 = arith.constant 0 : i32
    return %arg0, %arg1 : i32, i32
  }
  func.func @transform_1(%arg0: i32, %arg1: i32) -> (i32, i32) {
    %c0_i32 = arith.constant 0 : i32
    %c0_i32_0 = arith.constant 0 : i32
    return %arg0, %c0_i32 : i32, i32
  }
  func.func @transform_2(%arg0: i32, %arg1: i32) -> (i32, i32, i32) {
    %c0_i32 = arith.constant 0 : i32
    %c0_i32_0 = arith.constant 0 : i32
    %c0_i32_1 = arith.constant 0 : i32
    return %arg0, %c0_i32, %c0_i32_0 : i32, i32, i32
  }
}

</mosaic_0001>

<bundles_post_ra>
// kernel: tpu_custom_call.1
= control target key start
LH: loop header
LB: loop body
LE: loop exit
PB: predicated region body
PF: predicated region fallthrough
CT: control target
= control target key end

     0   :  { %vm28_vm0 = vcmask 261120   ;;  %s185_s0 = inlined_call_operand.vmem [shape: f32[8,32], index: 0, kind: input, shape index: {}]   ;;  %s186_s1 = inlined_call_operand.vmem [shape: s32[8,1], index: 1, kind: input, shape index: {}]   ;;  %s187_s2 = inlined_call_operand.hbm [shape: f32[1,1,128], index: 2, kind: output, shape index: {}]  }
   0x1   :  { %v26_v0 = vld [vmem:[%s185_s0] sm:$0xff] }
   0x2   :  { %7 = vsyncpa [#allocation6], 0  ;;  %v29_v1 = vsel %vm28_vm0, %v26_v0, -inf  ;;  %vm16_vm1 = vcmask 7168   ;;  %v138_v2 = vmov -1e+30   ;;  %v24_v13 = vlaneseq }
   0x3   :  { %30 = vmax.xlane.f32.xlu0 %v29_v1  ;;  %17 = vst.msk [vmem:[#allocation2] sm:$0xff] %vm16_vm1, %v138_v2  ;;  %v139_v3 = vmov 0   ;;  %v20_v4 = vld [vmem:[%s186_s1] sm:$0xff]  ;;  %v140_v5 = vmov 0.0   ;;  %s141_s0 = smov [#allocation5]  }
   0x4   :  { %106 = vset.pattern.permute.xlu0 %v139_v3  ;;  %107 = vset.pattern.permute.xlu1 %v139_v3  ;;  %18 = vst.msk [vmem:[#allocation3] sm:$0xff] %vm16_vm1, %v140_v5  ;;  %19 = vst.msk [vmem:[#allocation4] sm:$0xff] %vm16_vm1, %v140_v5  ;;  %v25_v14 = vand.u32 127, %v24_v13  ;;  %s92_s1 = sshll.u32 %s141_s0, 4  ;;  %s93_s1 = int_to_ptr.vmem [resolvable:$true] %s92_s1 }
   0x5   :  { %54 = vperm.xlu1 %107, %v20_v4   ;;  %s114_s14 = scalar_lea.vmem %s93_s1, 16  ;;  %s118_s15 = scalar_lea.vmem %s93_s1, 32 }
   0x6   :  { %p115_p0 = scmp.ne.s32.totalorder %s93_s1, %s114_s14  ;;  %p119_p1 = scmp.lt.s32.totalorder %s93_s1, %s93_s1 }
   0x7   :  { %p120_p2 = scmp.lt.s32.totalorder %s118_s15, %s114_s14 }
   0x9   :  { %p121_p3 = por %p120_p2, %p119_p1 }
   0xa   :  { %v27_v6 = vld [vmem:[#allocation2] sm:$0xff] }
   0xb   :  { %v44_v22 = vld [vmem:[#allocation3] sm:$0xff]  ;;  %v57_v26 = vld [vmem:[#allocation4] sm:$0xff]  ;;  %p122_p4 = pnand %p121_p3, %p115_p0 }
  0x84   :  { %v55_v15 = vpop.permute.xlu1 %54 }
  0x85   :  { %vm56_vm2 = vcmp.eq.s32.totalorder %v25_v14, %v55_v15 }
  0x86   :  { %v58_v17 = vsel %vm56_vm2, %v26_v0, 0.0 }
  0x87   :  { %v59_v19 = vsel %vm28_vm0, %v58_v17, 0.0 }
  0x90   :  { %v31_v7 = vpop.xlane.xlu0 %30 }
  0x91   :  { %v32_v8 = vmax.f32 %v27_v6, %v31_v7 }
  0x93   :  { %v33_v9 = vsub.f32 %v27_v6, %v32_v8  ;;  %52 = vst.msk [vmem:[#allocation2] sm:$0xff] %vm16_vm1, %v32_v8  ;;  %38 = vperm.xlu0 %106, %v32_v8  }
  0x95   :  { %v34_v20 = vmul.f32 1.442695, %v33_v9 }
  0x9a   :  { %v67_v32 = vld [vmem:[#allocation2] sm:$0xff] }
 0x112   :  { %v39_v10 = vpop.permute.xlu0 %38 }
 0x113   :  { %v41_v11 = vsub.f32 %v26_v0, %v39_v10 }
 0x115   :  { %v42_v12 = vmul.f32 1.442695, %v41_v11 }
 0x117   :  { %108 = vpow2.f32 %v42_v12 }
 0x118   :  { %110 = vpow2.f32 %v34_v20 }
 0x121   :  { %v109_v16 = vpop.eup %108 }
 0x122   :  { %v46_v18 = vsel %vm28_vm0, %v109_v16, 0.0  ;;  %v111_v21 = vpop.eup %110 }
 0x123   :  { %47 = vadd.xlane.f32.xlu1 %v46_v18  ;;  %v45_v23 = vmul.f32 %v111_v21, %v44_v22 }
 0x127   :  { %60 = vadd.xlane.f32.xlu1 %v59_v19 }
 0x1b0   :  { %v48_v24 = vpop.xlane.xlu1 %47 }
 0x1b1   :  { %v49_v25 = vadd.f32 %v48_v24, %v45_v23 }
 0x1b3   :  { %51 = vst.msk [vmem:[#allocation3] sm:$0xff] %vm16_vm1, %v49_v25 }
 0x1b4   :  { %v61_v27 = vpop.xlane.xlu1 %60 }
 0x1b5   :  { %v62_v28 = vadd.f32 %v61_v27, %v57_v26 }
 0x1b7   :  { %63 = vst.msk [vmem:[#allocation4] sm:$0xff] %vm16_vm1, %v62_v28 }
 0x1ba   :  { %v68_v29 = vld [vmem:[#allocation3] sm:$0xff] }
 0x1bb   :  { %112 = vlog2.f32 %v68_v29 }
 0x1be   :  { %v72_v33 = vld [vmem:[#allocation4] sm:$0xff] }
 0x1c5   :  { %v113_v30 = vpop.eup %112 }
 0x1c6   :  { %v70_v31 = vmul.f32 0.6931472, %v113_v30 }
 0x1c8   :  { %v71_v34 = vadd.f32 %v70_v31, %v67_v32 }
 0x1ca   :  { %v73_v35 = vsub.f32 %v71_v34, %v72_v33 }
 0x1cc   :  { %v74_v36 = vsel %vm16_vm1, %v73_v35, 0.0 }
 0x1cd   :  { %75 = vadd.xlane.f32.xlu1 %v74_v36 }
 0x25a   :  { %v76_v37 = vpop.xlane.xlu1 %75 }
 0x25b   :  { %v77_v38 = vrot.slane %v76_v37, 4 }
 0x25d   :  { %v78_v39 = vadd.f32 %v77_v38, %v76_v37 }
 0x25f   :  { %v79_v40 = vrot.slane %v78_v39, 2 }
 0x261   :  { %v80_v41 = vadd.f32 %v79_v40, %v78_v39 }
 0x263   :  { %v81_v42 = vrot.slane %v80_v41, 1 }
 0x265   :  { %v82_v43 = vadd.f32 %v81_v42, %v80_v41 }
 0x267   :  { %100 = vpush %v82_v43 }
 0x298   :  { %s101_s13 = spop %100 }
 0x299   :  { %v84_v44 = vstv %s101_s13 }
 0x29a   :  { %85 = vst [vmem:[#allocation5] sm:$0x1] %v84_v44 }
 0x29b   :  { %125 = shalt.err (!%p122_p4)
}
 0x29c   :  { %s126_s18 = scalar_lea.hbm %s187_s2, 16 }
 0x29d   :  { %p127_p5 = scmp.ne.s32.totalorder %s187_s2, %s126_s18  ;;  %p130_p6 = scmp.lt.u32.totalorder %s126_s18, %s187_s2 }
 0x29f   :  { %p132_p7 = pnand %p130_p6, %p127_p5 }
 0x2a1   :  { %135 = shalt.err (!%p132_p7)
}
 0x2a2   :  { %95 = dma.vmem_to_hbm [thread:$0]  %s93_s1, 16, %s187_s2, [#allocation6]  }
 0x2a3   :  { %136 = dma.done.wait [#allocation6], 16  }
 0x2a4   :  { %137 = vsyncadd [#allocation6], 4294967280 }
 0x2a5   :  { %99 = vsyncpa [#allocation6], 1 }

</bundles_post_ra>
